<compile_context>
chip_gen: v7x
topology: tpu7x:2x2x1
jax: 0.10.0
libtpu: 0.0.40
codegen_flags: <defaults>
</compile_context>

<pallas_src>
import functools

import jax
import jax.numpy as jnp
from jax import lax
from jax.experimental import pallas as pl
from jax.experimental.pallas import tpu as pltpu


GAMMA = 2.0
ALPHA = 0.25          # scalar alpha -> alpha table [alpha, 1 - alpha]
SIZE_AVERAGE = True
_LANE = 128


def _focal_loss_kernel(x_ref, t_ref, acc_ref, *, gamma, alpha, num_classes,
                       need_mask):
    """One grid step: (1, C, TS, 128) logits + (1, TS, 128) targets ->
    per-element focal loss accumulated into the resident (1, TS, 128) block."""
    j = pl.program_id(1)

    @pl.when(j == 0)
    def _():
        acc_ref[...] = jnp.zeros_like(acc_ref)

    x = x_ref[0].astype(jnp.float32)              # (C, TS, 128)
    tgt = t_ref[0]                                # (TS, 128) int32
    C = num_classes

    # log-softmax over the class (leading) axis: unrolled elementwise ops.
    m = x[0]
    for c in range(1, C):
        m = jnp.maximum(m, x[c])
    z = [x[c] - m for c in range(C)]              # C x (TS, 128)
    sexp = jnp.exp(z[0])
    for c in range(1, C):
        sexp = sexp + jnp.exp(z[c])
    lse = jnp.log(sexp)                           # (TS, 128)

    # Gather z[target] with lane-wise selects (no one-hot / XLU reductions).
    if C == 2:
        zt = jnp.where(tgt == 0, z[0], z[1])
    else:
        zt = jnp.zeros_like(lse)
        for c in range(C):
            zt = jnp.where(tgt == c, z[c], zt)
    logpt = zt - lse                              # (TS, 128)
    pt = jnp.exp(logpt)

    # Focal weight: gamma == 2 -> plain multiply (avoid float pow on the EUP).
    w = 1.0 - pt
    g = float(gamma)
    if g == 2.0:
        wg = w * w
    elif g == int(g) and g >= 0:
        wg = lax.integer_pow(w, int(g))
    else:
        wg = jnp.power(jnp.maximum(w, 0.0), g)    # rare non-integer gamma path

    # alpha_t = alpha[target], baked in as compile-time constants.
    if alpha is not None:
        at = jnp.zeros_like(lse)
        for k in range(len(alpha)):
            at = jnp.where(tgt == k, jnp.float32(alpha[k]), at)
        logpt = logpt * at

    loss = -1.0 * wg * logpt                      # (TS, 128)
    if need_mask:
        # Padded lanes carry target == -1; force their contribution to zero.
        loss = jnp.where(tgt >= 0, loss, 0.0)

    acc_ref[...] += loss[None]


def _largest_divisor_leq(n, cap):
    for d in range(min(n, cap), 0, -1):
        if n % d == 0:
            return d
    return 1


def focal_loss(logits, target, *, gamma=GAMMA, alpha=ALPHA,
               size_average=SIZE_AVERAGE, max_sublane_tile=512):
    """Pallas focal loss.

    logits: (N, C) or (N, C, *spatial) float array (NCHW conv output ok).
    target: (N,) or (N, *spatial) integer class indices.
    """
    # --- layout: keep native NCHW; only free reshapes on the hot path -------
    if logits.ndim > 2:
        N, C = logits.shape[0], logits.shape[1]
        x = logits.reshape(N, C, -1)              # (N, C, HW) — view, no copy
    else:
        C = logits.shape[1]
        N = 1
        x = jnp.transpose(logits, (1, 0))[None]   # (1, C, M); small-C transpose
    HW = x.shape[2]
    M = N * HW                                    # true element count
    t = target.reshape(N, HW).astype(jnp.int32)

    # alpha as compile-time python constants (PyTorch: scalar -> [a, 1 - a]).
    if alpha is None:
        alpha_t = None
    elif isinstance(alpha, (float, int)):
        alpha_t = (float(alpha), 1.0 - float(alpha))
    else:
        alpha_t = tuple(float(a) for a in list(alpha))
    if alpha_t is not None and C > len(alpha_t):
        raise ValueError(
            f"alpha table has {len(alpha_t)} entries but input has {C} classes"
            " (PyTorch's alpha.gather would fail for targets >= len(alpha)).")

    # --- pad spatial axis to a multiple of 128 lanes (rare fallback path) ---
    pad = (-HW) % _LANE
    if pad:
        x = jnp.pad(x, ((0, 0), (0, 0), (0, pad)))
        t = jnp.pad(t, ((0, 0), (0, pad)), constant_values=-1)
    R = (HW + pad) // _LANE

    # Sublane tile: largest divisor of R, capped so the f32 working copy of the
    # logits tile stays ~1 MiB (VMEM-friendly on all of v5e/v6e/v7x).
    vmem_cap = max(8, (1 << 20) // (C * _LANE * 4))
    TS = _largest_divisor_leq(R, min(max_sublane_tile, vmem_cap))
    num_j = R // TS

    x = x.reshape(N, C, R, _LANE)                 # free reshape
    t = t.reshape(N, R, _LANE)

    kernel = functools.partial(
        _focal_loss_kernel, gamma=float(gamma), alpha=alpha_t,
        num_classes=int(C), need_mask=bool(pad))

    acc = pl.pallas_call(
        kernel,
        out_shape=jax.ShapeDtypeStruct((N, TS, _LANE), jnp.float32),
        grid_spec=pltpu.PrefetchScalarGridSpec(
            num_scalar_prefetch=0,
            grid=(N, num_j),
            in_specs=[
                pl.BlockSpec((1, C, TS, _LANE), lambda n, j: (n, 0, j, 0)),
                pl.BlockSpec((1, TS, _LANE), lambda n, j: (n, j, 0)),
            ],
            out_specs=pl.BlockSpec((1, TS, _LANE), lambda n, j: (n, 0, 0)),
        ),
        compiler_params=pltpu.CompilerParams(
            dimension_semantics=("parallel", "arbitrary")),
    )(x, t)                                       # dtype passed through as-is

    total = jnp.sum(acc)
    if size_average:
        return total / jnp.float32(M)
    return total


def _reference_focal_loss(logits, target, gamma=GAMMA, alpha=ALPHA,
                          size_average=SIZE_AVERAGE):
    """Pure-JAX reference mirroring the PyTorch module."""
    if logits.ndim > 2:
        N, C = logits.shape[0], logits.shape[1]
        x = jnp.transpose(logits.reshape(N, C, -1), (0, 2, 1)).reshape(-1, C)
    else:
        x = logits
    t = target.reshape(-1).astype(jnp.int32)
    logp = jax.nn.log_softmax(x.astype(jnp.float32), axis=1)
    logpt = jnp.take_along_axis(logp, t[:, None], axis=1)[:, 0]
    pt = jnp.exp(logpt)
    if isinstance(alpha, (float, int)):
        alpha_vec = jnp.array([alpha, 1.0 - alpha], dtype=jnp.float32)
    else:
        alpha_vec = jnp.asarray(alpha, dtype=jnp.float32)
    at = alpha_vec[t]
    loss = -1.0 * (1.0 - pt) ** gamma * (logpt * at)
    return loss.mean() if size_average else loss.sum()


if __name__ == "__main__":
    key = jax.random.PRNGKey(0)
    k1, k2 = jax.random.split(key)

    # Binary segmentation-style example: NCHW logits, per-pixel targets.
    N, C, H, W = 2, 2, 16, 16
    logits = jax.random.normal(k1, (N, C, H, W), dtype=jnp.float32)
    target = jax.random.randint(k2, (N, H, W), minval=0, maxval=C,
                                dtype=jnp.int32)

    out = focal_loss(logits, target)
    out = jax.block_until_ready(out)

    ref = _reference_focal_loss(logits, target)
    assert jnp.allclose(out, ref, atol=1e-6, rtol=1e-5), (out, ref)

    print("KERNEL_OK")
</pallas_src>

<mosaic_0001>
module attributes {stable_mosaic.version = 11 : i64} {
  func.func @_focal_loss_kernel(%arg0: i32, %arg1: i32, %arg2: memref<1x2x2x128xf32, #tpu.memory_space<vmem>>, %arg3: memref<1x2x128xi32, #tpu.memory_space<vmem>>, %arg4: memref<1x2x128xf32, #tpu.memory_space<vmem>>) attributes {dimension_semantics = [#tpu.dimension_semantics<parallel>, #tpu.dimension_semantics<arbitrary>], iteration_bounds = array<i64: 2, 1>, scalar_prefetch = 0 : i64, scratch_operands = 0 : i64, tpu.core_type = #tpu.core_type<tc>, window_params = [{transform_indices = @transform_0, window_bounds = array<i64: 1, 2, 2, 128>}, {transform_indices = @transform_1, window_bounds = array<i64: 1, 2, 128>}, {transform_indices = @transform_2, window_bounds = array<i64: 1, 2, 128>}]} {
    %c0_i32 = arith.constant 0 : i32
    %0 = arith.cmpi eq, %arg1, %c0_i32 : i32
    %1 = arith.extui %0 : i1 to i32
    %c0_i32_0 = arith.constant 0 : i32
    %2 = arith.cmpi ne, %1, %c0_i32_0 : i32
    scf.if %2 {
      %cst_19 = arith.constant 0.000000e+00 : f32
      %47 = vector.broadcast %cst_19 : f32 to vector<1x2x128xf32>
      %c0_20 = arith.constant 0 : index
      %c0_21 = arith.constant 0 : index
      %c0_22 = arith.constant 0 : index
      %48 = vector.load %arg4[%c0_20, %c0_21, %c0_22] : memref<1x2x128xf32, #tpu.memory_space<vmem>>, vector<1x2x128xf32>
      tpu.vector_store %arg4[%c0_20, %c0_21, %c0_22], %47 {strides = array<i32>} : memref<1x2x128xf32, #tpu.memory_space<vmem>>, vector<1x2x128xf32>,
    } else {
    }
    %c0 = arith.constant 0 : index
    %c0_1 = arith.constant 0 : index
    %c0_2 = arith.constant 0 : index
    %c0_3 = arith.constant 0 : index
    %3 = vector.load %arg2[%c0, %c0_1, %c0_2, %c0_3] : memref<1x2x2x128xf32, #tpu.memory_space<vmem>>, vector<1x2x2x128xf32>
    %4 = vector.shape_cast %3 : vector<1x2x2x128xf32> to vector<2x2x128xf32>
    %c0_4 = arith.constant 0 : index
    %c0_5 = arith.constant 0 : index
    %c0_6 = arith.constant 0 : index
    %5 = vector.load %arg3[%c0_4, %c0_5, %c0_6] : memref<1x2x128xi32, #tpu.memory_space<vmem>>, vector<1x2x128xi32>
    %6 = vector.shape_cast %5 : vector<1x2x128xi32> to vector<2x128xi32>
    %7 = vector.extract_strided_slice %4 {offsets = [0, 0, 0], sizes = [1, 2, 128], strides = [1, 1, 1]} : vector<2x2x128xf32> to vector<1x2x128xf32>
    %8 = vector.shape_cast %7 : vector<1x2x128xf32> to vector<2x128xf32>
    %9 = vector.extract_strided_slice %4 {offsets = [1, 0, 0], sizes = [1, 2, 128], strides = [1, 1, 1]} : vector<2x2x128xf32> to vector<1x2x128xf32>
    %10 = vector.shape_cast %9 : vector<1x2x128xf32> to vector<2x128xf32>
    %11 = arith.maximumf %8, %10 : vector<2x128xf32>
    %12 = vector.extract_strided_slice %4 {offsets = [0, 0, 0], sizes = [1, 2, 128], strides = [1, 1, 1]} : vector<2x2x128xf32> to vector<1x2x128xf32>
    %13 = vector.shape_cast %12 : vector<1x2x128xf32> to vector<2x128xf32>
    %14 = arith.subf %13, %11 : vector<2x128xf32>
    %15 = vector.extract_strided_slice %4 {offsets = [1, 0, 0], sizes = [1, 2, 128], strides = [1, 1, 1]} : vector<2x2x128xf32> to vector<1x2x128xf32>
    %16 = vector.shape_cast %15 : vector<1x2x128xf32> to vector<2x128xf32>
    %17 = arith.subf %16, %11 : vector<2x128xf32>
    %18 = math.exp %14 : vector<2x128xf32>
    %19 = math.exp %17 : vector<2x128xf32>
    %20 = arith.addf %18, %19 : vector<2x128xf32>
    %21 = math.log %20 : vector<2x128xf32>
    %c0_i32_7 = arith.constant 0 : i32
    %22 = vector.broadcast %c0_i32_7 : i32 to vector<2x128xi32>
    %23 = arith.cmpi eq, %6, %22 : vector<2x128xi32>
    %24 = arith.select %23, %14, %17 : vector<2x128xi1>, vector<2x128xf32>
    %25 = arith.subf %24, %21 : vector<2x128xf32>
    %26 = math.exp %25 : vector<2x128xf32>
    %cst = arith.constant 1.000000e+00 : f32
    %27 = vector.broadcast %cst : f32 to vector<2x128xf32>
    %28 = arith.subf %27, %26 : vector<2x128xf32>
    %29 = arith.mulf %28, %28 : vector<2x128xf32>
    %cst_8 = arith.constant 0.000000e+00 : f32
    %30 = vector.broadcast %cst_8 : f32 to vector<2x128xf32>
    %c0_i32_9 = arith.constant 0 : i32
    %31 = vector.broadcast %c0_i32_9 : i32 to vector<2x128xi32>
    %32 = arith.cmpi eq, %6, %31 : vector<2x128xi32>
    %cst_10 = arith.constant 2.500000e-01 : f32
    %33 = vector.broadcast %cst_10 : f32 to vector<2x128xf32>
    %34 = arith.select %32, %33, %30 : vector<2x128xi1>, vector<2x128xf32>
    %c1_i32 = arith.constant 1 : i32
    %35 = vector.broadcast %c1_i32 : i32 to vector<2x128xi32>
    %36 = arith.cmpi eq, %6, %35 : vector<2x128xi32>
    %cst_11 = arith.constant 7.500000e-01 : f32
    %37 = vector.broadcast %cst_11 : f32 to vector<2x128xf32>
    %38 = arith.select %36, %37, %34 : vector<2x128xi1>, vector<2x128xf32>
    %39 = arith.mulf %25, %38 : vector<2x128xf32>
    %cst_12 = arith.constant -1.000000e+00 : f32
    %40 = vector.broadcast %cst_12 : f32 to vector<2x128xf32>
    %41 = arith.mulf %40, %29 : vector<2x128xf32>
    %42 = arith.mulf %41, %39 : vector<2x128xf32>
    %c0_13 = arith.constant 0 : index
    %c0_14 = arith.constant 0 : index
    %c0_15 = arith.constant 0 : index
    %43 = vector.load %arg4[%c0_13, %c0_14, %c0_15] : memref<1x2x128xf32, #tpu.memory_space<vmem>>, vector<1x2x128xf32>
    %44 = vector.shape_cast %42 : vector<2x128xf32> to vector<1x2x128xf32>
    %45 = arith.addf %43, %44 : vector<1x2x128xf32>
    %c0_16 = arith.constant 0 : index
    %c0_17 = arith.constant 0 : index
    %c0_18 = arith.constant 0 : index
    %46 = vector.load %arg4[%c0_16, %c0_17, %c0_18] : memref<1x2x128xf32, #tpu.memory_space<vmem>>, vector<1x2x128xf32>
    tpu.vector_store %arg4[%c0_16, %c0_17, %c0_18], %45 {strides = array<i32>} : memref<1x2x128xf32, #tpu.memory_space<vmem>>, vector<1x2x128xf32>,
    return
  }
  func.func @transform_0(%arg0: i32, %arg1: i32) -> (i32, i32, i32, i32) {
    %c0_i32 = arith.constant 0 : i32
    %c0_i32_0 = arith.constant 0 : i32
    %c0_i32_1 = arith.constant 0 : i32
    return %arg0, %c0_i32, %arg1, %c0_i32_0 : i32, i32, i32, i32
  }
  func.func @transform_1(%arg0: i32, %arg1: i32) -> (i32, i32, i32) {
    %c0_i32 = arith.constant 0 : i32
    %c0_i32_0 = arith.constant 0 : i32
    return %arg0, %arg1, %c0_i32 : i32, i32, i32
  }
  func.func @transform_2(%arg0: i32, %arg1: i32) -> (i32, i32, i32) {
    %c0_i32 = arith.constant 0 : i32
    %c0_i32_0 = arith.constant 0 : i32
    %c0_i32_1 = arith.constant 0 : i32
    return %arg0, %c0_i32, %c0_i32_0 : i32, i32, i32
  }
}

</mosaic_0001>

<bundles_post_ra>
// kernel: tpu_custom_call.1
= control target key start
LH: loop header
LB: loop body
LE: loop exit
PB: predicated region body
PF: predicated region fallthrough
CT: control target
= control target key end

     0   :  { %7 = vsyncpa [#allocation3], 0  ;;  %s855_s0 = inlined_call_operand.hbm [shape: f32[2,2,2,128], index: 0, kind: input, shape index: {}]   ;;  %s856_s1 = inlined_call_operand.hbm [shape: s32[2,2,128], index: 1, kind: input, shape index: {}]   ;;  %s857_s2 = inlined_call_operand.hbm [shape: f32[2,2,128], index: 2, kind: output, shape index: {}]  }
   0x1   :  { %9 = vsyncpa [#allocation3 + $0x1], 0 }
   0x2   :  { %10 = vsyncpa [#allocation6], 0 }
   0x3   :  { %12 = vsyncpa [#allocation6 + $0x1], 0 }
   0x4   :  { %13 = vsyncpa [#allocation4], 0 }
   0x5   :  { %15 = vsyncpa [#allocation4 + $0x1], 0  ;;  %s634_s9 = smov 0   ;;  %s636_s10 = smov 0  }
   0x6   :  { %s638_s11 = smov 0   ;;  %s640_s12 = smov 0  }
   0x7   :  { %s642_s13 = smov 0   ;;  %s644_s14 = smov 0  }
   0x8 LB: > { %s369_s15 = sadd.s32 4294967295, %s611_s14   ;;  %s370_s16 = sadd.s32 4294967294, %s611_s14   ;;  %s611_s14 = sphi %s644_s14, %s21_s14   ;;  %s607_s13 = sphi %s642_s13, %s876_s13   ;;  %s603_s12 = sphi %s640_s12, %s875_s12   ;;  %s599_s11 = sphi %s638_s11, %s874_s11   ;;  %s595_s10 = sphi %s636_s10, %s873_s10   ;;  %s591_s9 = sphi %s634_s9, %s872_s9  }
   0x9   : > { %s33_s17 = sadd.s32 1, %s607_s13  ;;  %s42_s18 = sadd.s32 1, %s599_s11 }
   0xa   : > { %p35_p0 = scmp.ge.s32.totalorder %s33_s17, 2  ;;  %p49_p1 = scmp.ne.s32.totalorder %s599_s11, %s595_s10 }
   0xb   : > { %p50_p2 = scmp.eq.s32.totalorder %s611_s14, 0  ;;  %p55_p3 = scmp.ne.s32.totalorder %s595_s10, %s591_s9 }
   0xc   : > { %s878_s17 = smov (%p35_p0, %s33_s17), 0  ;;  %p56_p5 = scmp.eq.s32.totalorder %s369_s15, 0 }
   0xd   : > { %p675_p4 = por %p50_p2, %p49_p1  ;;  %s37_s20 = ssub.s32 %s607_s13, %s878_s17 }
   0xe   : > { %p107_p6 = scmp.eq.s32.totalorder %s369_s15, 1  ;;  %p40_p7 = scmp.eq.s32.totalorder %s37_s20, 0 }
   0xf   : > { %p681_p8 = por %p56_p5, %p55_p3  ;;  %p113_p10 = scmp.eq.s32.totalorder %s370_s16, 1 }
  0x10   : > { %p685_p9 = por %p107_p6, %p49_p1  ;;  %p404_p13 = scmp.lt.s32.totalorder %s611_s14, 2 }
  0x11   : > { %s861_s21 = scalar_select %p681_p8, 1, 0 }
  0x12   : > { %s862_s22 = scalar_select %p685_p9, 1, 0 }
  0x13   : > { %s690_s23 = scalar_select %p40_p7, %s599_s11, %s42_s18  }
  0x14   : > { %p692_p11 = por %p113_p10, %p55_p3  ;;  %s699_s25 = sand.u32 1, %s599_s11  }
  0x15   : > { %s373_s26 = sshll.u32 %s699_s25, 2  ;;  %s386_s27 = sshll.u32 %s607_s13, 6 }
  0x16   : > { %s863_s24 = scalar_select %p692_p11, 1, 0 }
  0x17   : > { %s706_s30 = scalar_lea.hbm %s855_s0, %s386_s27  ;;  %s137_s3 = scalar_lea.vmem [#allocation2], %s373_s26 }
  0x18   : > { %s145_s4 = sshll.u32 %s137_s3, 4  ;;  %p712_p0 = pnand %p404_p13, %p675_p4  ;;  %s708_s4 = int_to_ptr.vmem [resolvable:$true] %s145_s4 }
  0x19   : > { %s134_s6 = scalar_lea.sflag [#allocation3], %s699_s25  ;;  %s465_s7 = scalar_lea.hbm %s706_s30, 64 }
  0x1a   : > { %p466_p2 = scmp.ne.s32.totalorder %s706_s30, %s465_s7  ;;  %p467_p3 = pneg %p712_p0 }
  0x1b   : > { %s470_s16 = scalar_lea.hbm %s855_s0, 128  ;;  %p471_p4 = scmp.lt.u32.totalorder %s706_s30, %s855_s0 }
  0x1c   : > { %p468_p5 = pnand %p467_p3, %p466_p2  ;;  %p472_p7 = scmp.lt.u32.totalorder %s470_s16, %s465_s7 }
  0x1d   : > { %p474_p13 = scmp.lt.u32.totalorder %s465_s7, %s706_s30 }
  0x1e   : > { %p469_p6 = pneg %p468_p5  ;;  %p473_p10 = por %p472_p7, %p471_p4 }
  0x20   : > { %p475_p12 = por %p474_p13, %p473_p10 }
  0x22   : > { %p476_p1 = pnand %p475_p12, %p469_p6 }
  0x24   : > { %479 = shalt.err (!%p476_p1)
}
  0x25   : > { %s480_s20 = scalar_lea.vmem %s708_s4, 64  ;;  %s613_s26 = smov [#allocation2]  }
  0x26   : > { %p481_p2 = scmp.ne.s32.totalorder %s708_s4, %s480_s20  ;;  %s485_s27 = sshll.u32 %s613_s26, 4  ;;  %s486_s27 = int_to_ptr.vmem [resolvable:$false] %s485_s27 }
  0x27   : > { %s487_s28 = scalar_lea.vmem %s486_s27, 128  ;;  %p488_p9 = scmp.lt.s32.totalorder %s708_s4, %s486_s27 }
  0x28   : > { %p483_p5 = pnand %p481_p2, %p467_p3  ;;  %p489_p4 = scmp.lt.s32.totalorder %s487_s28, %s480_s20 }
  0x2a   : > { %p484_p11 = pneg %p483_p5  ;;  %p490_p7 = por %p489_p4, %p488_p9 }
  0x2c   : > { %p491_p10 = pnand %p490_p7, %p484_p11 }
  0x2e   : > { %494 = shalt.err (!%p491_p10)
}
  0x2f   : > { %s614_s29 = smov 32   ;;  %s615_s3 = smov 2  }
  0x30   : > { %396 = dma.hbm_to_vmem [thread:$0]  (!%p712_p0), %s706_s30, 64, %s708_s4, %s134_s6, %s614_s29, %s614_s29, %s615_s3  }
  0x31   : > { %p172_p12 = scmp.lt.s32.totalorder %s611_s14, 3  ;;  %s376_s7 = sshll.u32 %s699_s25, 1 }
  0x32   : > { %s377_s8 = sshll.u32 %s607_s13, 5  ;;  %p865_p9 = scmp.ge.s32.totalorder %s611_s14, 1 }
  0x33   : > { %s757_s19 = scalar_lea.hbm %s856_s1, %s377_s8  ;;  %s159_s20 = scalar_lea.vmem [#allocation5], %s376_s7 }
  0x34   : > { %p750_p11 = pnand %p865_p9, %p172_p12  ;;  %s167_s26 = sshll.u32 %s159_s20, 4  ;;  %s168_s26 = int_to_ptr.vmem [resolvable:$true] %s167_s26 }
  0x35   : > { %s156_s30 = scalar_lea.sflag [#allocation6], %s699_s25  ;;  %s495_s4 = scalar_lea.hbm %s757_s19, 32 }
  0x36   : > { %s866_s15 = scalar_select %p750_p11, 1, 0 }
  0x37   : > { %p496_p1 = scmp.ne.s32.totalorder %s757_s19, %s495_s4  ;;  %s500_s28 = scalar_lea.hbm %s856_s1, 64 }
  0x38   : > { %p501_p2 = scmp.lt.u32.totalorder %s757_s19, %s856_s1  ;;  %p502_p5 = scmp.lt.u32.totalorder %s500_s28, %s495_s4 }
  0x39   : > { %p498_p6 = pnand %p496_p1, %p467_p3  ;;  %p504_p7 = scmp.lt.u32.totalorder %s495_s4, %s757_s19 }
  0x3a   : > { %p503_p4 = por %p502_p5, %p501_p2 }
  0x3b   : > { %p499_p13 = pneg %p498_p6 }
  0x3c   : > { %p505_p10 = por %p504_p7, %p503_p4 }
  0x3e   : > { %p506_p12 = pnand %p505_p10, %p499_p13 }
  0x40   : > { %509 = shalt.err (!%p506_p12)
}
  0x41   : > { %s510_s25 = scalar_lea.vmem %s168_s26, 32  ;;  %s616_s7 = smov [#allocation5]  }
  0x42   : > { %p511_p9 = scmp.ne.s32.totalorder %s168_s26, %s510_s25  ;;  %s515_s8 = sshll.u32 %s616_s7, 4  ;;  %s516_s8 = int_to_ptr.vmem [resolvable:$false] %s515_s8 }
  0x43   : > { %s517_s16 = scalar_lea.vmem %s516_s8, 64  ;;  %p518_p8 = scmp.lt.s32.totalorder %s168_s26, %s516_s8 }
  0x44   : > { %p513_p1 = pnand %p511_p9, %p467_p3  ;;  %p519_p11 = scmp.lt.s32.totalorder %s517_s16, %s510_s25 }
  0x46   : > { %p514_p6 = pneg %p513_p1  ;;  %p520_p2 = por %p519_p11, %p518_p8 }
  0x48   : > { %p521_p5 = pnand %p520_p2, %p514_p6 }
  0x4a   : > { %524 = shalt.err (!%p521_p5)
}
  0x4b   : > { %399 = dma.hbm_to_vmem [thread:$0]  (!%p712_p0), %s757_s19, 32, %s168_s26, %s156_s30  }
  0x4c   : > { %p867_p13 = scmp.ne.s32.totalorder %s866_s15, 0 }
  0x4d   : > { %s782_s18 = sand.u32 (!%p867_p13), 1, %s595_s10   ;;  %p868_p3 = scmp.ne.s32.totalorder (!%p867_p13), %s861_s21, 0 }
  0x4e   : > { %176 = sbr.rel (%p867_p13) target bundleno = 163 (0xa3), region = 28  ;;  %s379_s20 = sshll.u32 (!%p867_p13), %s782_s18, 2 }
  0x4f   : > { %s179_s4 = scalar_lea.sflag (!%p867_p13), [#allocation3], %s782_s18  ;;  %s182_s6 = scalar_lea.vmem (!%p867_p13), [#allocation2], %s379_s20 }
  0x55   : > { %578 = dma.done.wait (%p868_p3), %s179_s4, 64  }
  0x56   : > { %580 = vsyncadd (%p868_p3), %s179_s4, 4294967232  ;;  %s380_s5 = sshll.u32 %s782_s18, 1  ;;  %s188_s15 = scalar_lea.sflag [#allocation6], %s782_s18 }
  0x57   : > { %s191_s19 = scalar_lea.vmem [#allocation5], %s380_s5 }
  0x58   : > { %582 = dma.done.wait (%p868_p3), %s188_s15, 32  }
  0x59   : > { %584 = vsyncadd (%p868_p3), %s188_s15, 4294967264  ;;  %s796_s26 = scalar_lea.vmem [#allocation7], %s380_s5  ;;  %v617_v0 = vmov 0.0   ;;  %v222_v1 = vld [vmem:[%s182_s6] sm:$0x3]  ;;  %s383_s21 = sshll.u32 %s603_s12, 5 }
  0x5a   : > { %221 = vst [vmem:[%s796_s26] sm:$0x3] %v617_v0  ;;  %v223_v2 = vld [vmem:[%s182_s6 + $0x2] sm:$0x3]  ;;  %v224_v11 = vld [vmem:[%s191_s19] sm:$0x3]  ;;  %s265_s30 = sshll.u32 %s796_s26, 4  ;;  %s805_s29 = scalar_lea.hbm %s857_s2, %s383_s21  ;;  %s807_s30 = int_to_ptr.vmem [resolvable:$true] %s265_s30 }
  0x5b   : > { %v225_v3 = vmax.f32 %v222_v1, %v223_v2  ;;  %vm235_vm0 = vcmp.eq.s32.totalorder %v224_v11, 0  ;;  %vm243_vm1 = vcmp.eq.s32.totalorder %v224_v11, 1  ;;  %s252_s3 = scalar_lea.sflag [#allocation4], %s782_s18  ;;  %s525_s25 = scalar_lea.vmem %s807_s30, 32 }
  0x5c   : > { %v242_v17 = vsel %vm235_vm0, 0.25, %v617_v0  ;;  %p526_p8 = scmp.ne.s32.totalorder %s807_s30, %s525_s25  ;;  %p869_p0 = scmp.ne.s32.totalorder %s862_s22, 0 }
  0x5d   : > { %v226_v4 = vsub.f32 %v222_v1, %v225_v3  ;;  %v227_v5 = vsub.f32 %v223_v2, %v225_v3  ;;  %v244_v19 = vsel %vm243_vm1, 0.75, %v242_v17  ;;  %s618_s12 = smov [#allocation7]  }
  0x5e   : > { %p527_p11 = pnand %p526_p8, %p869_p0  ;;  %s529_s7 = sshll.u32 %s618_s12, 4  ;;  %s530_s7 = int_to_ptr.vmem [resolvable:$false] %s529_s7 }
  0x5f   : > { %v228_v6 = vmul.f32 1.442695, %v226_v4  ;;  %v230_v7 = vmul.f32 1.442695, %v227_v5  ;;  %v236_v13 = vsel %vm235_vm0, %v226_v4, %v227_v5  ;;  %s531_s8 = scalar_lea.vmem %s530_s7, 64  ;;  %p532_p7 = scmp.lt.s32.totalorder %s807_s30, %s530_s7 }
  0x60   : > { %p528_p4 = pneg %p527_p11  ;;  %p533_p10 = scmp.lt.s32.totalorder %s531_s8, %s525_s25 }
  0x61   : > { %457 = vpow2.f32 %v228_v6  ;;  %v248_v24 = vld [vmem:[%s796_s26] sm:$0x3] }
  0x62   : > { %459 = vpow2.f32 %v230_v7  ;;  %p534_p12 = por %p533_p10, %p532_p7 }
  0x64   : > { %p535_p9 = pnand %p534_p12, %p528_p4 }
  0x6b   : > { %v458_v8 = vpop.eup %457 }
  0x6c   : > { %v460_v9 = vpop.eup %459 }
  0x6d   : > { %v232_v10 = vadd.f32 %v460_v9, %v458_v8 }
  0x6f   : > { %461 = vlog2.f32 %v232_v10 }
  0x79   : > { %v462_v12 = vpop.eup %461 }
  0x7a   : > { %v234_v14 = vmul.f32 0.6931472, %v462_v12 }
  0x7c   : > { %v237_v15 = vsub.f32 %v236_v13, %v234_v14 }
  0x7e   : > { %v238_v16 = vmul.f32 1.442695, %v237_v15  ;;  %v245_v22 = vmul.f32 %v244_v19, %v237_v15 }
  0x80   : > { %463 = vpow2.f32 %v238_v16 }
  0x8a   : > { %v464_v18 = vpop.eup %463 }
  0x8b   : > { %v240_v20 = vsub.f32 1.0, %v464_v18 }
  0x8d   : > { %v241_v21 = vmul.f32 %v240_v20, %v240_v20 }
  0x8f   : > { %v246_v23 = vmul.f32 -1.0, %v241_v21 }
  0x91   : > { %v247_v25 = vmul.f32 %v246_v23, %v245_v22 }
  0x93   : > { %v249_v26 = vadd.f32 %v248_v24, %v247_v25 }
  0x95   : > { %250 = vst [vmem:[%s796_s26] sm:$0x3] %v249_v26 }
  0x96   : > { %538 = shalt.err (!%p535_p9)
}
  0x97   : > { %s539_s16 = scalar_lea.hbm %s805_s29, 32  ;;  %s543_s4 = scalar_lea.hbm %s857_s2, 64 }
  0x98   : > { %p540_p1 = scmp.ne.s32.totalorder %s805_s29, %s539_s16  ;;  %p544_p5 = scmp.lt.u32.totalorder %s805_s29, %s857_s2 }
  0x99   : > { %p545_p13 = scmp.lt.u32.totalorder %s543_s4, %s539_s16  ;;  %p547_p8 = scmp.lt.u32.totalorder %s539_s16, %s805_s29 }
  0x9a   : > { %p541_p6 = pnand %p540_p1, %p869_p0 }
  0x9b   : > { %p546_p3 = por %p545_p13, %p544_p5 }
  0x9c   : > { %p542_p2 = pneg %p541_p6 }
  0x9d   : > { %p548_p11 = por %p547_p8, %p546_p3 }
  0x9f   : > { %p549_p4 = pnand %p548_p11, %p542_p2 }
  0xa1   : > { %552 = shalt.err (!%p549_p4)
}
  0xa2   : > { %391 = dma.vmem_to_hbm [thread:$0]  (%p869_p0), %s807_s30, 32, %s805_s29, %s252_s3  }
  0xa3 PF: > { %s277_s15 = sand.u32 1, %s591_s9   ;;  %p870_p7 = scmp.ne.s32.totalorder %s863_s24, 0 }
  0xa4   : > { %p871_p10 = scmp.ge.s32.totalorder %s611_s14, 2  ;;  %s278_s19 = scalar_lea.sflag [#allocation4], %s277_s15 }
  0xa6   : > { %p401_p12 = pnand %p871_p10, %p870_p7 }
  0xa8   : > { %586 = dma.done.wait (!%p401_p12), %s278_s19, 32  }
  0xa9   : > { %588 = vsyncadd (!%p401_p12), %s278_s19, 4294967264  ;;  %s21_s14 = sadd.s32 1, %s611_s14   ;;  %s872_s9 = smov %s595_s10 }
  0xaa   : > { %p18_p9 = scmp.ge.s32.totalorder %s21_s14, 4   ;;  %s873_s10 = smov %s599_s11 }
  0xab   : > { %s874_s11 = smov %s690_s23  ;;  %s875_s12 = smov %s607_s13 }
  0xac   : > { %s876_s13 = smov %s878_s17  ;;  %20 = sbr.rel (!%p18_p9) target bundleno = 8 (0x8), region = 90 }
  0xb3   :  { %283 = vsyncpa [#allocation3], 1 }
  0xb4   :  { %285 = vsyncpa [#allocation3 + $0x1], 1 }
  0xb5   :  { %286 = vsyncpa [#allocation6], 1 }
  0xb6   :  { %288 = vsyncpa [#allocation6 + $0x1], 1 }
  0xb7   :  { %289 = vsyncpa [#allocation4], 1 }
  0xb8   :  { %291 = vsyncpa [#allocation4 + $0x1], 1 }

</bundles_post_ra>
